<compile_context>
chip_gen: v7x
topology: tpu7x:2x2x1
jax: 0.10.0
libtpu: 0.0.40
codegen_flags: <defaults>
</compile_context>

<pallas_src>
import functools

import jax
import jax.numpy as jnp
from jax.experimental import pallas as pl
from jax.experimental.pallas import tpu as pltpu


def _vid_kernel(x_ref, t_ref, w1_ref, w2_ref, w3_ref, iv_ref,
                out_ref, acc_ref, *, scale):
    """One (batch, hw-tile) step of the VID loss.

    x_ref  : (C_in,  T)   student activations, lane-dense
    t_ref  : (C_t,   T)   teacher activations, lane-dense
    w1_ref : (C_mid, C_in)   1x1 conv #1 weight (out, in)
    w2_ref : (C_mid, C_mid)  1x1 conv #2 weight
    w3_ref : (C_t,   C_mid)  1x1 conv #3 weight
    iv_ref : (C_t, 1)     1 / (softplus(log_scale)+eps), broadcast over lanes
    out_ref: (1, 1)       0.5 * sum(diff^2 * inv_var) / total_elems
    acc_ref: (C_t, T) VMEM vector accumulator, resident across the grid
    """
    b = pl.program_id(0)
    j = pl.program_id(1)
    is_first = jnp.logical_and(b == 0, j == 0)
    is_last = jnp.logical_and(b == pl.num_programs(0) - 1,
                              j == pl.num_programs(1) - 1)

    @pl.when(is_first)
    def _():
        acc_ref[...] = jnp.zeros_like(acc_ref)

    x = x_ref[...].astype(jnp.float32)                       # (C_in, T)

    # regressor: conv1x1 -> ReLU -> conv1x1 -> ReLU -> conv1x1 (all lane-dense)
    h1 = jnp.maximum(
        jnp.dot(w1_ref[...], x, preferred_element_type=jnp.float32), 0.0)
    h2 = jnp.maximum(
        jnp.dot(w2_ref[...], h1, preferred_element_type=jnp.float32), 0.0)
    pred_mean = jnp.dot(w3_ref[...], h2,
                        preferred_element_type=jnp.float32)  # (C_t, T)

    diff = pred_mean - t_ref[...].astype(jnp.float32)
    # per-element partial sums; single cross-lane reduce deferred to last step
    acc_ref[...] += diff * diff * iv_ref[...]

    @pl.when(is_last)
    def _():
        out_ref[...] = jnp.sum(acc_ref[...], keepdims=True) * scale


def _adaptive_avg_pool2d(x_nchw, out_hw):
    """Adaptive avg-pool for the divisible case (same as F.adaptive_avg_pool2d)."""
    n, c, h, w = x_nchw.shape
    if h == out_hw and w == out_hw:
        return x_nchw
    # TODO(synk): non-divisible adaptive pooling (uneven bins) not implemented.
    assert h % out_hw == 0 and w % out_hw == 0
    kh, kw = h // out_hw, w // out_hw
    x = x_nchw.reshape(n, c, out_hw, kh, out_hw, kw)
    return x.mean(axis=(3, 5))


def vid_regressor_loss(inp_nchw, tgt_nchw, w1, w2, w3, log_scale,
                       eps=1e-5, tile_hw=8192):
    """JAX wrapper reproducing VIDRegressor.forward.

    inp_nchw : (N, C_in, H, W)     tgt_nchw : (N, C_t, H_t, W_t)
    w1 : (C_mid, C_in)  w2 : (C_mid, C_mid)  w3 : (C_t, C_mid)
        (PyTorch conv1x1 weights with the trailing 1x1 squeezed)
    log_scale : (C_t,)
    """
    s_h, t_h = inp_nchw.shape[2], tgt_nchw.shape[2]
    if s_h > t_h:
        inp_nchw = _adaptive_avg_pool2d(inp_nchw, t_h)
    elif s_h < t_h:
        tgt_nchw = _adaptive_avg_pool2d(tgt_nchw, s_h)

    n, c_in, h, w = inp_nchw.shape
    c_t = tgt_nchw.shape[1]
    c_mid = w1.shape[0]
    hw = h * w

    # Pick a lane-dense tile; fall back to the full row when it doesn't divide.
    if tile_hw > hw or hw % tile_hw != 0 or (tile_hw % 128 != 0 and tile_hw != hw):
        tile_hw = hw  # TODO(synk): ragged H*W tiling not implemented.

    # Free reshapes: no NCHW->NHWC transpose, no extra HBM pass.
    x3 = inp_nchw.reshape(n, c_in, hw)
    t3 = tgt_nchw.reshape(n, c_t, hw)

    # Hoisted per-channel constants (stable softplus).
    var = jax.nn.softplus(log_scale.astype(jnp.float32)) + eps      # (C_t,)
    inv_var = (1.0 / var).reshape(c_t, 1)

    total_elems = float(n * hw * c_t)
    scale = 0.5 / total_elems

    kernel = functools.partial(_vid_kernel, scale=scale)

    grid = (n, hw // tile_hw)
    # TODO(synk): v7x dual-TensorCore split (two partial accumulators) not done;
    # single resident accumulator => both grid axes are "arbitrary".
    sq = pl.pallas_call(
        kernel,
        out_shape=jax.ShapeDtypeStruct((1, 1), jnp.float32),
        grid_spec=pltpu.PrefetchScalarGridSpec(
            num_scalar_prefetch=0,
            grid=grid,
            in_specs=[
                pl.BlockSpec((None, c_in, tile_hw), lambda b, j: (b, 0, j)),  # x
                pl.BlockSpec((None, c_t, tile_hw), lambda b, j: (b, 0, j)),   # t
                pl.BlockSpec((c_mid, c_in), lambda b, j: (0, 0)),             # w1
                pl.BlockSpec((c_mid, c_mid), lambda b, j: (0, 0)),            # w2
                pl.BlockSpec((c_t, c_mid), lambda b, j: (0, 0)),              # w3
                pl.BlockSpec((c_t, 1), lambda b, j: (0, 0)),                  # inv_var
            ],
            out_specs=pl.BlockSpec((1, 1), lambda b, j: (0, 0)),
            scratch_shapes=[pltpu.VMEM((c_t, tile_hw), jnp.float32)],
        ),
        compiler_params=pltpu.CompilerParams(
            dimension_semantics=("arbitrary", "arbitrary")),
    )(x3, t3, w1, w2, w3, inv_var)

    # Analytic constant term: 0.5 * mean(log var) over all elements equals the
    # per-channel mean (var is constant over N, H, W).
    return sq[0, 0] + 0.5 * jnp.mean(jnp.log(var))


def _reference_loss(inp_nchw, tgt_nchw, w1, w2, w3, log_scale, eps=1e-5):
    """Pure-JAX reference for sanity checking (weights in (out, in) layout)."""
    n, c_in, h, w = inp_nchw.shape
    c_t = tgt_nchw.shape[1]
    x = jnp.transpose(inp_nchw, (0, 2, 3, 1)).reshape(-1, c_in)
    t = jnp.transpose(tgt_nchw, (0, 2, 3, 1)).reshape(-1, c_t)
    h1 = jax.nn.relu(x @ w1.T)
    h2 = jax.nn.relu(h1 @ w2.T)
    pred = h2 @ w3.T
    var = jax.nn.softplus(log_scale) + eps
    nlp = 0.5 * ((pred - t) ** 2 / var + jnp.log(var))
    return jnp.mean(nlp)


if __name__ == "__main__":
    import numpy as np

    # Small shapes consistent with the module: batch=2, C_in=4, C_mid=8,
    # C_target=4, spatial=16x16 (student and teacher same spatial size).
    N, C_IN, C_MID, C_T, S = 2, 4, 8, 4, 16
    INIT_PRED_VAR, EPS = 5.0, 1e-5

    key = jax.random.PRNGKey(0)
    k_inp, k_tgt, k_w1, k_w2, k_w3 = jax.random.split(key, 5)

    inp = jax.random.normal(k_inp, (N, C_IN, S, S), dtype=jnp.float32)
    tgt = jax.random.normal(k_tgt, (N, C_T, S, S), dtype=jnp.float32)

    # Conv1x1 weights in PyTorch (out, in) layout (kernel 1x1 squeezed).
    w1 = (jax.random.normal(k_w1, (C_MID, C_IN), dtype=jnp.float32)
          / np.sqrt(C_IN))
    w2 = (jax.random.normal(k_w2, (C_MID, C_MID), dtype=jnp.float32)
          / np.sqrt(C_MID))
    w3 = (jax.random.normal(k_w3, (C_T, C_MID), dtype=jnp.float32)
          / np.sqrt(C_MID))

    # log_scale = log(exp(init_pred_var - eps) - 1) * ones(C_T)
    log_scale = jnp.full(
        (C_T,), float(np.log(np.exp(INIT_PRED_VAR - EPS) - 1.0)),
        dtype=jnp.float32)

    loss = vid_regressor_loss(inp, tgt, w1, w2, w3, log_scale, eps=EPS)
    loss = jax.block_until_ready(loss)

    ref = _reference_loss(inp, tgt, w1, w2, w3, log_scale, eps=EPS)
    np.testing.assert_allclose(np.asarray(loss), np.asarray(ref),
                               rtol=1e-5, atol=1e-5)
    print("KERNEL_OK")
</pallas_src>

<mosaic_0001>
module attributes {stable_mosaic.version = 11 : i64} {
  func.func @_vid_kernel(%arg0: i32, %arg1: i32, %arg2: memref<1x4x256xf32, #tpu.memory_space<vmem>>, %arg3: memref<1x4x256xf32, #tpu.memory_space<vmem>>, %arg4: memref<8x4xf32, #tpu.memory_space<vmem>>, %arg5: memref<8x8xf32, #tpu.memory_space<vmem>>, %arg6: memref<4x8xf32, #tpu.memory_space<vmem>>, %arg7: memref<4x1xf32, #tpu.memory_space<vmem>>, %arg8: memref<1x1xf32, #tpu.memory_space<vmem>>, %arg9: memref<4x256xf32, #tpu.memory_space<vmem>>) attributes {dimension_semantics = [#tpu.dimension_semantics<arbitrary>, #tpu.dimension_semantics<arbitrary>], iteration_bounds = array<i64: 2, 1>, scalar_prefetch = 0 : i64, scratch_operands = 1 : i64, tpu.core_type = #tpu.core_type<tc>, window_params = [{transform_indices = @transform_0, window_bounds = array<i64: 1, 4, 256>}, {transform_indices = @transform_1, window_bounds = array<i64: 1, 4, 256>}, {pipeline_mode = #tpu.pipeline_mode<synchronous>, transform_indices = @transform_2, window_bounds = array<i64: 8, 4>}, {pipeline_mode = #tpu.pipeline_mode<synchronous>, transform_indices = @transform_3, window_bounds = array<i64: 8, 8>}, {pipeline_mode = #tpu.pipeline_mode<synchronous>, transform_indices = @transform_4, window_bounds = array<i64: 4, 8>}, {pipeline_mode = #tpu.pipeline_mode<synchronous>, transform_indices = @transform_5, window_bounds = array<i64: 4, 1>}, {pipeline_mode = #tpu.pipeline_mode<synchronous>, transform_indices = @transform_6, window_bounds = array<i64: 1, 1>}]} {
    %c0_i32 = arith.constant 0 : i32
    %0 = arith.cmpi eq, %arg0, %c0_i32 : i32
    %c0_i32_0 = arith.constant 0 : i32
    %1 = arith.cmpi eq, %arg1, %c0_i32_0 : i32
    %2 = arith.andi %0, %1 : i1
    %c1_i32 = arith.constant 1 : i32
    %3 = arith.cmpi eq, %arg0, %c1_i32 : i32
    %c0_i32_1 = arith.constant 0 : i32
    %4 = arith.cmpi eq, %arg1, %c0_i32_1 : i32
    %5 = arith.andi %3, %4 : i1
    %6 = arith.extui %2 : i1 to i32
    %c0_i32_2 = arith.constant 0 : i32
    %7 = arith.cmpi ne, %6, %c0_i32_2 : i32
    scf.if %7 {
      %cst_25 = arith.constant 0.000000e+00 : f32
      %32 = vector.broadcast %cst_25 : f32 to vector<4x256xf32>
      %c0_26 = arith.constant 0 : index
      %c0_27 = arith.constant 0 : index
      %33 = vector.load %arg9[%c0_26, %c0_27] : memref<4x256xf32, #tpu.memory_space<vmem>>, vector<4x256xf32>
      tpu.vector_store %arg9[%c0_26, %c0_27], %32 {strides = array<i32>} : memref<4x256xf32, #tpu.memory_space<vmem>>, vector<4x256xf32>,
    } else {
    }
    %c0 = arith.constant 0 : index
    %c0_3 = arith.constant 0 : index
    %c0_4 = arith.constant 0 : index
    %8 = vector.load %arg2[%c0, %c0_3, %c0_4] : memref<1x4x256xf32, #tpu.memory_space<vmem>>, vector<1x4x256xf32>
    %9 = vector.shape_cast %8 : vector<1x4x256xf32> to vector<4x256xf32>
    %c0_5 = arith.constant 0 : index
    %c0_6 = arith.constant 0 : index
    %10 = vector.load %arg4[%c0_5, %c0_6] : memref<8x4xf32, #tpu.memory_space<vmem>>, vector<8x4xf32>
    %cst = arith.constant dense<0.000000e+00> : vector<8x256xf32>
    %11 = tpu.matmul %10, %9, %cst {dimension_numbers = #tpu.dot_dimension_numbers<[1], [0], [0], [1], [0, 0, 1, 1], [], []>} : vector<8x4xf32>, vector<4x256xf32>, vector<8x256xf32> -> vector<8x256xf32>
    %cst_7 = arith.constant 0.000000e+00 : f32
    %12 = vector.broadcast %cst_7 : f32 to vector<8x256xf32>
    %13 = arith.maximumf %11, %12 : vector<8x256xf32>
    %c0_8 = arith.constant 0 : index
    %c0_9 = arith.constant 0 : index
    %14 = vector.load %arg5[%c0_8, %c0_9] : memref<8x8xf32, #tpu.memory_space<vmem>>, vector<8x8xf32>
    %cst_10 = arith.constant dense<0.000000e+00> : vector<8x256xf32>
    %15 = tpu.matmul %14, %13, %cst_10 {dimension_numbers = #tpu.dot_dimension_numbers<[1], [0], [0], [1], [0, 0, 1, 1], [], []>} : vector<8x8xf32>, vector<8x256xf32>, vector<8x256xf32> -> vector<8x256xf32>
    %cst_11 = arith.constant 0.000000e+00 : f32
    %16 = vector.broadcast %cst_11 : f32 to vector<8x256xf32>
    %17 = arith.maximumf %15, %16 : vector<8x256xf32>
    %c0_12 = arith.constant 0 : index
    %c0_13 = arith.constant 0 : index
    %18 = vector.load %arg6[%c0_12, %c0_13] : memref<4x8xf32, #tpu.memory_space<vmem>>, vector<4x8xf32>
    %cst_14 = arith.constant dense<0.000000e+00> : vector<4x256xf32>
    %19 = tpu.matmul %18, %17, %cst_14 {dimension_numbers = #tpu.dot_dimension_numbers<[1], [0], [0], [1], [0, 0, 1, 1], [], []>} : vector<4x8xf32>, vector<8x256xf32>, vector<4x256xf32> -> vector<4x256xf32>
    %c0_15 = arith.constant 0 : index
    %c0_16 = arith.constant 0 : index
    %c0_17 = arith.constant 0 : index
    %20 = vector.load %arg3[%c0_15, %c0_16, %c0_17] : memref<1x4x256xf32, #tpu.memory_space<vmem>>, vector<1x4x256xf32>
    %21 = vector.shape_cast %20 : vector<1x4x256xf32> to vector<4x256xf32>
    %22 = arith.subf %19, %21 : vector<4x256xf32>
    %c0_18 = arith.constant 0 : index
    %c0_19 = arith.constant 0 : index
    %23 = vector.load %arg9[%c0_18, %c0_19] : memref<4x256xf32, #tpu.memory_space<vmem>>, vector<4x256xf32>
    %24 = arith.mulf %22, %22 : vector<4x256xf32>
    %c0_20 = arith.constant 0 : index
    %c0_21 = arith.constant 0 : index
    %25 = vector.load %arg7[%c0_20, %c0_21] : memref<4x1xf32, #tpu.memory_space<vmem>>, vector<4x1xf32>
    %26 = vector.broadcast %25 : vector<4x1xf32> to vector<4x256xf32>
    %27 = arith.mulf %24, %26 : vector<4x256xf32>
    %28 = arith.addf %23, %27 : vector<4x256xf32>
    %c0_22 = arith.constant 0 : index
    %c0_23 = arith.constant 0 : index
    %29 = vector.load %arg9[%c0_22, %c0_23] : memref<4x256xf32, #tpu.memory_space<vmem>>, vector<4x256xf32>
    tpu.vector_store %arg9[%c0_22, %c0_23], %28 {strides = array<i32>} : memref<4x256xf32, #tpu.memory_space<vmem>>, vector<4x256xf32>,
    %30 = arith.extui %5 : i1 to i32
    %c0_i32_24 = arith.constant 0 : i32
    %31 = arith.cmpi ne, %30, %c0_i32_24 : i32
    scf.if %31 {
      %c0_25 = arith.constant 0 : index
      %c0_26 = arith.constant 0 : index
      %32 = vector.load %arg9[%c0_25, %c0_26] : memref<4x256xf32, #tpu.memory_space<vmem>>, vector<4x256xf32>
      %33 = vector.shape_cast %32 : vector<4x256xf32> to vector<1x4x256xf32>
      %cst_27 = arith.constant dense<0.000000e+00> : vector<1xf32>
      %34 = vector.multi_reduction <add>, %33, %cst_27 [1, 2] : vector<1x4x256xf32> to vector<1xf32>
      %35 = vector.shape_cast %34 : vector<1xf32> to vector<1x1x1xf32>
      %36 = vector.extract %35[0, 0, 0] : f32 from vector<1x1x1xf32>
      %37 = vector.broadcast %36 : f32 to vector<1x1xf32>
      %cst_28 = arith.constant 2.44140625E-4 : f32
      %38 = vector.broadcast %cst_28 : f32 to vector<1x1xf32>
      %39 = arith.mulf %37, %38 : vector<1x1xf32>
      %c0_29 = arith.constant 0 : index
      %c0_30 = arith.constant 0 : index
      %40 = vector.load %arg8[%c0_29, %c0_30] : memref<1x1xf32, #tpu.memory_space<vmem>>, vector<1x1xf32>
      tpu.vector_store %arg8[%c0_29, %c0_30], %39 {strides = array<i32>} : memref<1x1xf32, #tpu.memory_space<vmem>>, vector<1x1xf32>,
    } else {
    }
    return
  }
  func.func @transform_0(%arg0: i32, %arg1: i32) -> (i32, i32, i32) {
    %c0_i32 = arith.constant 0 : i32
    %c0_i32_0 = arith.constant 0 : i32
    return %arg0, %c0_i32, %arg1 : i32, i32, i32
  }
  func.func @transform_1(%arg0: i32, %arg1: i32) -> (i32, i32, i32) {
    %c0_i32 = arith.constant 0 : i32
    %c0_i32_0 = arith.constant 0 : i32
    return %arg0, %c0_i32, %arg1 : i32, i32, i32
  }
  func.func @transform_2(%arg0: i32, %arg1: i32) -> (i32, i32) {
    %c0_i32 = arith.constant 0 : i32
    %c0_i32_0 = arith.constant 0 : i32
    %c0_i32_1 = arith.constant 0 : i32
    return %c0_i32, %c0_i32_0 : i32, i32
  }
  func.func @transform_3(%arg0: i32, %arg1: i32) -> (i32, i32) {
    %c0_i32 = arith.constant 0 : i32
    %c0_i32_0 = arith.constant 0 : i32
    %c0_i32_1 = arith.constant 0 : i32
    return %c0_i32, %c0_i32_0 : i32, i32
  }
  func.func @transform_4(%arg0: i32, %arg1: i32) -> (i32, i32) {
    %c0_i32 = arith.constant 0 : i32
    %c0_i32_0 = arith.constant 0 : i32
    %c0_i32_1 = arith.constant 0 : i32
    return %c0_i32, %c0_i32_0 : i32, i32
  }
  func.func @transform_5(%arg0: i32, %arg1: i32) -> (i32, i32) {
    %c0_i32 = arith.constant 0 : i32
    %c0_i32_0 = arith.constant 0 : i32
    %c0_i32_1 = arith.constant 0 : i32
    return %c0_i32, %c0_i32_0 : i32, i32
  }
  func.func @transform_6(%arg0: i32, %arg1: i32) -> (i32, i32) {
    %c0_i32 = arith.constant 0 : i32
    %c0_i32_0 = arith.constant 0 : i32
    %c0_i32_1 = arith.constant 0 : i32
    return %c0_i32, %c0_i32_0 : i32, i32
  }
}

</mosaic_0001>

<bundles_post_ra>
// kernel: tpu_custom_call.1
= control target key start
LH: loop header
LB: loop body
LE: loop exit
PB: predicated region body
PF: predicated region fallthrough
CT: control target
= control target key end

     0   :  { %11 = vsyncpa [#allocation4], 0  ;;  %s1118_s0 = inlined_call_operand.vmem [shape: f32[2,4,256], index: 0, kind: input, shape index: {}]   ;;  %s1119_s1 = inlined_call_operand.hbm [shape: f32[2,4,256], index: 1, kind: input, shape index: {}]   ;;  %s1120_s2 = inlined_call_operand.vmem [shape: f32[8,4], index: 2, kind: input, shape index: {}]   ;;  %s1121_s3 = inlined_call_operand.vmem [shape: f32[8,8], index: 3, kind: input, shape index: {}]   ;;  %s1122_s4 = inlined_call_operand.vmem [shape: f32[4,8], index: 4, kind: input, shape index: {}]   ;;  %s1123_s5 = inlined_call_operand.vmem [shape: f32[4,1], index: 5, kind: input, shape index: {}]   ;;  %s1124_s6 = inlined_call_operand.hbm [shape: f32[1,1], index: 6, kind: output, shape index: {}]  }
   0x1   :  { %13 = vsyncpa [#allocation4 + $0x1], 0 }
   0x2   :  { %14 = vsyncpa [#allocation5], 0  ;;  %s938_s21 = smov 0   ;;  %s940_s22 = smov 0  }
   0x3   :  { %s942_s23 = smov 0   ;;  %s944_s24 = smov 0  }
   0x4   :  { %s946_s25 = smov 0   ;;  %s948_s26 = smov 0  }
   0x5 LB: > { %s690_s27 = sadd.s32 4294967295, %s896_s26   ;;  %s32_s28 = sadd.s32 1, %s892_s25  ;;  %s896_s26 = sphi %s948_s26, %s20_s26   ;;  %s892_s25 = sphi %s946_s25, %s1135_s25   ;;  %s888_s24 = sphi %s944_s24, %s1134_s24   ;;  %s884_s23 = sphi %s942_s23, %s1133_s23   ;;  %s880_s22 = sphi %s940_s22, %s1132_s22   ;;  %s876_s21 = sphi %s938_s21, %s1131_s21  }
   0x6   : > { %p34_p0 = scmp.ge.s32.totalorder %s32_s28, 2  ;;  %s69_s29 = sadd.s32 1, %s884_s23 }
   0x7   : > { %p76_p1 = scmp.ne.s32.totalorder %s884_s23, %s880_s22  ;;  %p77_p2 = scmp.eq.s32.totalorder %s896_s26, 0 }
   0x8   : > { %s1137_s28 = smov (%p34_p0, %s32_s28), 0  ;;  %p82_p4 = scmp.ne.s32.totalorder %s880_s22, %s876_s21 }
   0x9   : > { %p974_p3 = por %p77_p2, %p76_p1  ;;  %s64_s7 = ssub.s32 %s892_s25, %s1137_s28 }
   0xa   : > { %p83_p5 = scmp.eq.s32.totalorder %s690_s27, 0  ;;  %p67_p6 = scmp.eq.s32.totalorder %s64_s7, 0 }
   0xb   : > { %p727_p8 = scmp.lt.s32.totalorder %s896_s26, 2  ;;  %s236_s10 = sand.u32 1, %s884_s23  }
   0xc   : > { %p983_p7 = por %p83_p5, %p82_p4  ;;  %s711_s11 = sshll.u32 %s892_s25, 7 }
   0xd   : > { %s989_s9 = scalar_select %p67_p6, %s884_s23, %s69_s29  }
   0xe   : > { %s693_s12 = sshll.u32 %s236_s10, 3  ;;  %s996_s15 = scalar_lea.hbm %s1119_s1, %s711_s11 }
   0xf   : > { %s240_s16 = scalar_lea.vmem [#allocation3], %s693_s12  ;;  %p1000_p9 = pnand %p727_p8, %p974_p3 }
  0x10   : > { %s250_s17 = sshll.u32 %s240_s16, 4  ;;  %s237_s19 = scalar_lea.sflag [#allocation4], %s236_s10  ;;  %s1004_s17 = int_to_ptr.vmem [resolvable:$true] %s250_s17 }
  0x11   : > { %s786_s20 = scalar_lea.hbm %s996_s15, 128  ;;  %p788_p13 = pneg %p1000_p9 }
  0x12   : > { %p787_p12 = scmp.ne.s32.totalorder %s996_s15, %s786_s20  ;;  %s791_s30 = scalar_lea.hbm %s1119_s1, 256 }
  0x13   : > { %p792_p2 = scmp.lt.u32.totalorder %s996_s15, %s1119_s1  ;;  %p793_p3 = scmp.lt.u32.totalorder %s791_s30, %s786_s20 }
  0x14   : > { %p789_p0 = pnand %p788_p13, %p787_p12  ;;  %p795_p5 = scmp.lt.u32.totalorder %s786_s20, %s996_s15 }
  0x15   : > { %p794_p4 = por %p793_p3, %p792_p2 }
  0x16   : > { %p790_p1 = pneg %p789_p0 }
  0x17   : > { %p796_p6 = por %p795_p5, %p794_p4 }
  0x19   : > { %p797_p8 = pnand %p796_p6, %p790_p1 }
  0x1b   : > { %800 = shalt.err (!%p797_p8)
}
  0x1c   : > { %s801_s10 = scalar_lea.vmem %s1004_s17, 128  ;;  %s898_s12 = smov [#allocation3]  }
  0x1d   : > { %p802_p12 = scmp.ne.s32.totalorder %s1004_s17, %s801_s10  ;;  %s806_s13 = sshll.u32 %s898_s12, 4  ;;  %s807_s13 = int_to_ptr.vmem [resolvable:$false] %s806_s13 }
  0x1e   : > { %s808_s14 = scalar_lea.vmem %s807_s13, 256  ;;  %p809_p11 = scmp.lt.s32.totalorder %s1004_s17, %s807_s13 }
  0x1f   : > { %p804_p0 = pnand %p802_p12, %p788_p13  ;;  %p810_p2 = scmp.lt.s32.totalorder %s808_s14, %s801_s10 }
  0x21   : > { %p805_p10 = pneg %p804_p0  ;;  %p811_p3 = por %p810_p2, %p809_p11 }
  0x23   : > { %p812_p4 = pnand %p811_p3, %p805_p10 }
  0x25   : > { %815 = shalt.err (!%p812_p4)
}
  0x26   : > { %726 = dma.hbm_to_vmem [thread:$0]  (!%p1000_p9), %s996_s15, 128, %s1004_s17, %s237_s19  }
  0x27   : > { %p1128_p1 = scmp.lt.s32.totalorder %s896_s26, 3  ;;  %p1129_p5 = scmp.ge.s32.totalorder %s896_s26, 1 }
  0x29   : > { %p256_p13 = pnand %p1129_p5, %p1128_p1 }
  0x2a   : > { %s261_s16 = sand.u32 (!%p256_p13), 1, %s880_s22  }
  0x2b   : > { %259 = sbr.rel (%p256_p13) target bundleno = 969 (0x3c9), region = 44  ;;  %s1038_s20 = sshll.u32 (!%p256_p13), %s261_s16, 3 }
  0x2c   : > { %s262_s21 = scalar_lea.sflag (!%p256_p13), [#allocation4], %s261_s16  ;;  %s265_s29 = scalar_lea.vmem (!%p256_p13), [#allocation3], %s1038_s20 }
  0x32   : > { %867 = dma.done.wait (%p983_p7), %s262_s21, 128  }
  0x33   : > { %869 = vsyncadd (%p983_p7), %s262_s21, 4294967168  ;;  %p299_p9 = scmp.lt.s32.totalorder %s888_s24, 1  ;;  %p309_p10 = scmp.eq.s32.totalorder %s888_s24, 0 }
  0x34   : > { %p313_p11 = scmp.eq.s32.totalorder %s888_s24, 1  ;;  %v899_v0 = vmov (%p309_p10), 0.0  }
  0x35   : > { %s300_s15 = scalar_select %p299_p9, %s888_s24, 1 }
  0x36   : > { %317 = sbr.rel (!%p309_p10) target bundleno = 61 (0x3d), region = 52  ;;  %318 = vst [vmem:[#allocation2] sm:$0xff] (%p309_p10), %v899_v0 }
  0x37   : > { %s712_s17 = sshll.u32 %s300_s15, 3 }
  0x38   : > { %s306_s30 = scalar_lea.vmem %s1118_s0, %s712_s17 }
  0x3d PF: > { %v319_v1 = vld [vmem:[%s306_s30] sm:$0xff]  ;;  %vm327_vm0 = vcmask 1043456   ;;  %v900_v3 = vmov 0.0   ;;  %vm323_vm1 = vcmask 31744   ;;  %vm406_vm2 = vcmask 64512   ;;  %v558_v17 = vld [vmem:[%s265_s29] sm:$0xff] }
  0x3e   : > { %v322_v2 = vcombine.high %v319_v1, %v319_v1  ;;  %396 = vmatprep.mubr.f32.mxu0 %v900_v3  ;;  %474 = vmatprep.mubr.f32.mxu1 %v900_v3  ;;  %v320_v4 = vld [vmem:[%s1120_s2] sm:$0xff]  ;;  %v901_v11 = vmov 0   ;;  %v560_v18 = vcombine.high %v558_v17, %v558_v17  ;;  %vm601_vm3 = vcmask (%p313_p11), 0  }
  0x3f   : > { %v405_v9 = vld [vmem:[%s1121_s3] sm:$0xff]  ;;  %782 = vset.pattern.permute.xlu0 %v901_v11 }
  0x40   : > { %702 = vmatprep.subr.msk.mxu0 %vm327_vm0, %v322_v2  ;;  %v567_v10 = vld [vmem:[%s1123_s5] sm:$0xf] }
  0x41   : > { %703 = vmatpush1.msk.msra.mxu0 %vm327_vm0, %v319_v1  ;;  %570 = vperm.xlu0 %782, %v567_v10   ;;  %v483_v16 = vld [vmem:[%s1122_s4] sm:$0xf] }
  0x42   : > { %704 = vmatmul.mubr.msk.f32.vlgmr.msra.gmra.mrb[0].mxu0 %vm323_vm1, %v320_v4  ;;  %v564_v28 = vld [vmem:[#allocation2] sm:$0xff] }
  0x43   : > { %551 = vmatprep.mubr.f32.mxu0 %v900_v3 }
  0xc0   : > { %v571_v23 = vpop.permute.xlu0 %570 }
 0x115   : > { %v398_v5 = vpop.f32.mrb[0].mxu0 }
 0x116   : > { %v400_v6 = vpop.f32.mrb[1].mxu0  ;;  %v403_v8 = vmax.f32 %v398_v5, 0.0 }
 0x117   : > { %v404_v7 = vmax.f32 %v400_v6, 0.0 }
 0x119   : > { %410 = vmatprep.subr.mxu1 %v404_v7 }
 0x11a   : > { %411 = vmatpush1.msra.mxu1 %v403_v8 }
 0x11b   : > { %705 = vmatmul.mubr.msk.f32.vlgmr.msra.gmra.mrb[0].mxu1 %vm406_vm2, %v405_v9 }
 0x1ee   : > { %v476_v12 = vpop.f32.mrb[0].mxu1 }
 0x1ef   : > { %v478_v13 = vpop.f32.mrb[1].mxu1  ;;  %v481_v15 = vmax.f32 %v476_v12, 0.0 }
 0x1f0   : > { %v482_v14 = vmax.f32 %v478_v13, 0.0 }
 0x1f2   : > { %487 = vmatprep.subr.mxu0 %v482_v14 }
 0x1f3   : > { %488 = vmatpush1.msra.mxu0 %v481_v15 }
 0x1f4   : > { %706 = vmatmul.mubr.msk.f32.vlgmr.msra.gmra.mrb[2].mxu0 %vm406_vm2, %v483_v16 }
 0x2c7   : > { %v553_v19 = vpop.f32.mrb[2].mxu0 }
 0x2c8   : > { %v562_v20 = vsub.f32 %v553_v19, %v558_v17  ;;  %v555_v21 = vpop.f32.mrb[3].mxu0 }
 0x2c9   : > { %v563_v22 = vsub.f32 %v555_v21, %v560_v18 }
 0x2ca   : > { %v565_v24 = vmul.f32 %v562_v20, %v562_v20 }
 0x2cb   : > { %v566_v25 = vmul.f32 %v563_v22, %v563_v22 }
 0x2cc   : > { %v573_v26 = vmul.f32 %v571_v23, %v565_v24 }
 0x2cd   : > { %v574_v27 = vmul.f32 %v571_v23, %v566_v25  ;;  %582 = sbr.rel (!%p313_p11) target bundleno = 944 (0x3b0), region = 56 }
 0x2cf   : > { %v577_v29 = vcombine.low %v573_v26, %v574_v27 }
 0x2d1   : > { %v579_v30 = vadd.f32 %v577_v29, %v564_v28 }
 0x2d3   : > { %580 = vst [vmem:[#allocation2] sm:$0xff] %v579_v30 }
 0x2da   : > { %v583_v31 = vld [vmem:[#allocation2] sm:$0xff] }
 0x2db   : > { %v585_v32 = vcombine.high %v583_v31, %v583_v31  ;;  %v587_v33 = vsel %vm327_vm0, %v583_v31, 0.0 }
 0x2dd   : > { %v588_v34 = vsel %vm327_vm0, %v585_v32, 0.0 }
 0x2de   : > { %v589_v35 = vadd.f32 %v588_v34, %v587_v33 }
 0x2e0   : > { %590 = vadd.xlane.f32.xlu0 %v589_v35 }
 0x36d   : > { %v591_v36 = vpop.xlane.xlu0 %590 }
 0x36e   : > { %v592_v37 = vrot.slane %v591_v36, 4 }
 0x370   : > { %v593_v38 = vadd.f32 %v592_v37, %v591_v36 }
 0x372   : > { %v594_v39 = vrot.slane %v593_v38, 2 }
 0x374   : > { %v595_v40 = vadd.f32 %v594_v39, %v593_v38 }
 0x376   : > { %v596_v41 = vrot.slane %v595_v40, 1 }
 0x378   : > { %v597_v42 = vadd.f32 %v596_v41, %v595_v40 }
 0x37a   : > { %715 = vpush %v597_v42 }
 0x3ab   : > { %s716_s20 = spop %715 }
 0x3ac   : > { %v599_v43 = vstv %s716_s20 }
 0x3ad   : > { %v600_v44 = vmul.f32 0.00024414063, %v599_v43 }
 0x3af   : > { %602 = vst.msk [vmem:[#allocation6] sm:$0x1] %vm601_vm3, %v600_v44 }
 0x3b0 PF: > { %p1074_p7 = scmp.eq.s32.totalorder %s690_s27, 1  ;;  %s902_s21 = smov [#allocation6]  }
 0x3b1   : > { %s610_s29 = sshll.u32 %s902_s21, 4  ;;  %s611_s29 = int_to_ptr.vmem [resolvable:$true] %s610_s29 }
 0x3b2   : > { %s816_s15 = scalar_lea.vmem %s611_s29, 16  ;;  %s822_s17 = scalar_lea.vmem %s611_s29, 32 }
 0x3b3   : > { %p817_p6 = scmp.ne.s32.totalorder %s611_s29, %s816_s15  ;;  %p823_p0 = scmp.lt.s32.totalorder %s611_s29, %s611_s29 }
 0x3b4   : > { %p824_p2 = scmp.lt.s32.totalorder %s822_s17, %s816_s15 }
 0x3b5   : > { %p818_p8 = pnand %p817_p6, %p1074_p7 }
 0x3b6   : > { %p825_p3 = por %p824_p2, %p823_p0 }
 0x3b7   : > { %p819_p12 = pneg %p818_p8 }
 0x3b9   : > { %p826_p4 = pnand %p825_p3, %p819_p12 }
 0x3bb   : > { %829 = shalt.err (!%p826_p4)
}
 0x3bc   : > { %s830_s19 = scalar_lea.hbm %s1124_s6, 16 }
 0x3bd   : > { %p831_p1 = scmp.ne.s32.totalorder %s1124_s6, %s830_s19  ;;  %p836_p9 = scmp.lt.u32.totalorder %s830_s19, %s1124_s6 }
 0x3bf   : > { %p832_p5 = pnand %p831_p1, %p1074_p7 }
 0x3c1   : > { %p833_p13 = pneg %p832_p5 }
 0x3c3   : > { %p838_p10 = pnand %p836_p9, %p833_p13 }
 0x3c5   : > { %841 = shalt.err (!%p838_p10)
}
 0x3c6   : > { %720 = dma.vmem_to_hbm [thread:$0]  (%p1074_p7), %s611_s29, 16, %s1124_s6, [#allocation5]  }
 0x3c7   : > { %871 = dma.done.wait (%p1074_p7), [#allocation5], 16  }
 0x3c8   : > { %873 = vsyncadd (%p1074_p7), [#allocation5], 4294967280 }
 0x3c9 PF: > { %s20_s26 = sadd.s32 1, %s896_s26   ;;  %s1131_s21 = smov %s880_s22 }
 0x3ca   : > { %p17_p11 = scmp.ge.s32.totalorder %s20_s26, 4   ;;  %s1132_s22 = smov %s884_s23 }
 0x3cb   : > { %s1133_s23 = smov %s989_s9  ;;  %s1134_s24 = smov %s892_s25 }
 0x3cc   : > { %s1135_s25 = smov %s1137_s28  ;;  %19 = sbr.rel (!%p17_p11) target bundleno = 5 (0x5), region = 92 }
 0x3d3   :  { %623 = vsyncpa [#allocation4], 1 }
 0x3d4   :  { %625 = vsyncpa [#allocation4 + $0x1], 1 }
 0x3d5   :  { %626 = vsyncpa [#allocation5], 1 }
 0x3d6   :  { %628 = vsyncpa [#allocation5 + $0x1], 1 }

</bundles_post_ra>
